<compile_context>
chip_gen: v6e
topology: v6e:2x2x1
jax: 0.10.0
libtpu: 0.0.40
codegen_flags: <defaults>
</compile_context>

<pallas_src>
import jax
import jax.numpy as jnp
from jax.experimental import pallas as pl
from jax.experimental.pallas import tpu as pltpu

BN_EPS = 1e-5
LANE = 128
SUBLANE = 8


# ----------------------------------------------------------------------------
# small helpers
# ----------------------------------------------------------------------------
def _round_up(x, m):
    return ((x + m - 1) // m) * m


def _pad2(a, rows, cols):
    return jnp.pad(a, ((0, rows - a.shape[0]), (0, cols - a.shape[1])))


def _pad_vec(a, n):
    return jnp.pad(a, (0, n - a.shape[0]))


def _default_elem_dtype():
    """bf16 elementwise on chips with a bf16 VPU (v6e/v7x); f32 otherwise."""
    try:
        kind = jax.devices()[0].device_kind.lower()
    except Exception:
        return jnp.float32
    if "v6" in kind or "v7" in kind:
        return jnp.bfloat16
    return jnp.float32


def _vmem_capacity_bytes():
    try:
        return int(pltpu.get_tpu_info().vmem_capacity_bytes)
    except Exception:
        return 64 * 2**20  # conservative: v7x per-TensorCore VMEM


def _choose_tile_b(batch, target=512):
    """Batch tile: multiple of 8, no over-padding, even grid when batch allows."""
    b8 = _round_up(max(batch, 1), SUBLANE)
    if b8 <= 4 * SUBLANE:          # tiny batch: a single tile
        return b8
    n_tiles = max(2, pl.cdiv(b8, target))
    if n_tiles % 2:                # even grid -> both v7x TensorCores busy
        n_tiles += 1
    return _round_up(pl.cdiv(b8, n_tiles), SUBLANE)


def _const_spec(shape, n_grid_axes, single_buffer):
    """BlockSpec for a VMEM-resident (constant block index) weight/bias."""
    zeros = (0,) * len(shape)
    if n_grid_axes == 1:
        index_map = lambda i: zeros
    else:
        index_map = lambda i, l: zeros
    if single_buffer:
        return pl.BlockSpec(shape, index_map, pipeline_mode=pl.Buffered(1))
    return pl.BlockSpec(shape, index_map)


# ----------------------------------------------------------------------------
# kernels
# ----------------------------------------------------------------------------
def _linear_relu(x, w, b, elem_dtype):
    """x @ w (bf16 MXU operands, f32 accumulate) + b, ReLU — in elem_dtype."""
    h = jnp.dot(x.astype(w.dtype), w, preferred_element_type=jnp.float32)
    h = h.astype(elem_dtype) + b
    return jnp.maximum(h, 0.0)


def _make_resident_kernel(n_hidden, elem_dtype):
    """All layers fused; all (folded) weights VMEM-resident."""
    if n_hidden > 0:
        def kernel(x_ref, w_in_ref, b_in_ref, w_h_ref, b_h_ref,
                   w_out_ref, b_out_ref, o_ref):
            h = _linear_relu(x_ref[...], w_in_ref[...], b_in_ref[...], elem_dtype)
            for j in range(n_hidden):            # static unroll over layers
                h = _linear_relu(h, w_h_ref[j], b_h_ref[j], elem_dtype)
            y = jnp.dot(h.astype(w_out_ref.dtype), w_out_ref[...],
                        preferred_element_type=jnp.float32) + b_out_ref[...]
            o_ref[...] = y.astype(o_ref.dtype)
    else:
        def kernel(x_ref, w_in_ref, b_in_ref, w_out_ref, b_out_ref, o_ref):
            h = _linear_relu(x_ref[...], w_in_ref[...], b_in_ref[...], elem_dtype)
            y = jnp.dot(h.astype(w_out_ref.dtype), w_out_ref[...],
                        preferred_element_type=jnp.float32) + b_out_ref[...]
            o_ref[...] = y.astype(o_ref.dtype)
    return kernel


def _make_streaming_kernel(elem_dtype):
    """Hidden (w, b) streamed one layer per grid step; activations in scratch."""
    def kernel(x_ref, w_in_ref, b_in_ref, w_h_ref, b_h_ref,
               w_out_ref, b_out_ref, o_ref, h_ref):
        l = pl.program_id(1)

        @pl.when(l == 0)
        def _():
            h_ref[...] = _linear_relu(x_ref[...], w_in_ref[...], b_in_ref[...],
                                      elem_dtype)

        h_ref[...] = _linear_relu(h_ref[...], w_h_ref[0], b_h_ref[0], elem_dtype)

        @pl.when(l == pl.num_programs(1) - 1)
        def _():
            y = jnp.dot(h_ref[...].astype(w_out_ref.dtype), w_out_ref[...],
                        preferred_element_type=jnp.float32) + b_out_ref[...]
            o_ref[...] = y.astype(o_ref.dtype)

    return kernel


# ----------------------------------------------------------------------------
# parameter preparation (one-time per parameter set: fold BN, pad, cast)
# ----------------------------------------------------------------------------
def prepare_params(params, *, matmul_dtype=jnp.bfloat16, elem_dtype=None,
                   out_dtype=jnp.bfloat16):
    if elem_dtype is None:
        elem_dtype = _default_elem_dtype()

    w_in, b_in = params["w_in"], params["b_in"]
    n_in, width = w_in.shape
    n_out = params["w_out"].shape[1]
    w_pad = _round_up(width, LANE)
    n_pad = _round_up(n_out, LANE)

    w_in_p = _pad2(w_in, n_in, w_pad).astype(matmul_dtype)      # K unpadded
    b_in_p = _pad_vec(b_in, w_pad).astype(elem_dtype)[None, :]

    w_hs, b_hs = [], []
    for hp in params["hiddens"]:
        scale = hp["gamma"] * jax.lax.rsqrt(hp["run_var"] + BN_EPS)
        w_f = hp["w"] * scale[None, :]
        b_f = (hp["b"] - hp["run_mean"]) * scale + hp["beta"]
        w_hs.append(_pad2(w_f, w_pad, w_pad).astype(matmul_dtype))
        b_hs.append(_pad_vec(b_f, w_pad).astype(elem_dtype)[None, :])
    n_hidden = len(w_hs)
    w_h = jnp.stack(w_hs) if n_hidden else None                  # (L, w_pad, w_pad)
    b_h = jnp.stack(b_hs) if n_hidden else None                  # (L, 1, w_pad)

    w_out_p = _pad2(params["w_out"], w_pad, n_pad).astype(matmul_dtype)
    b_out_p = _pad_vec(params["b_out"], n_pad).astype(jnp.float32)[None, :]

    return dict(w_in=w_in_p, b_in=b_in_p, w_h=w_h, b_h=b_h,
                w_out=w_out_p, b_out=b_out_p,
                n_in=n_in, n_out=n_out, w_pad=w_pad, n_pad=n_pad,
                n_hidden=n_hidden, matmul_dtype=matmul_dtype,
                elem_dtype=elem_dtype, out_dtype=out_dtype)


# ----------------------------------------------------------------------------
# forward
# ----------------------------------------------------------------------------
def mlp_apply(x, prep, *, tile_b=None, force_stream=False):
    batch, n_in = x.shape
    if n_in != prep["n_in"]:
        raise ValueError("input feature dim mismatch")
    n_out, w_pad, n_pad = prep["n_out"], prep["w_pad"], prep["n_pad"]
    n_hidden = prep["n_hidden"]
    elem_dtype, out_dtype = prep["elem_dtype"], prep["out_dtype"]

    mm_bytes = jnp.dtype(prep["matmul_dtype"]).itemsize
    elem_bytes = jnp.dtype(elem_dtype).itemsize
    x_bytes = jnp.dtype(x.dtype).itemsize
    out_bytes = jnp.dtype(out_dtype).itemsize

    if n_hidden:
        weight_args = [prep["w_in"], prep["b_in"], prep["w_h"], prep["b_h"],
                       prep["w_out"], prep["b_out"]]
    else:
        weight_args = [prep["w_in"], prep["b_in"], prep["w_out"], prep["b_out"]]
    weight_bytes = sum(int(a.size) * a.dtype.itemsize for a in weight_args)

    # Generation-aware VMEM budget with headroom for compiler-internal scratch.
    vmem_budget = (_vmem_capacity_bytes() * 3) // 4

    # Batch tile: big (amortize per-step overhead, feed the MXU more M rows),
    # multiple of 8, clamped to VMEM, even grid when the batch allows.
    if tile_b is None:
        target = 1024 if w_pad <= 256 else 512
        tile_b = _choose_tile_b(batch, target)
    tile_b = min(_round_up(tile_b, SUBLANE), _round_up(batch, SUBLANE))
    per_row = n_in * x_bytes + n_pad * out_bytes + w_pad * (4 + 2 * elem_bytes)
    avail = max(vmem_budget - 2 * weight_bytes, vmem_budget // 4)
    max_tile = max(SUBLANE, ((avail // 3) // per_row) // SUBLANE * SUBLANE)
    tile_b = min(tile_b, max_tile)
    grid_b = pl.cdiv(batch, tile_b)

    # Weight-streaming fallback when the resident working set would not fit.
    stream = n_hidden > 0 and (force_stream or 2 * weight_bytes > vmem_budget // 2)

    tile_bytes = 2 * tile_b * (n_in * x_bytes + n_pad * out_bytes)
    tile_bytes += tile_b * w_pad * (4 + 2 * elem_bytes)
    if stream:
        resident = weight_bytes - int(prep["w_h"].size) * mm_bytes \
                   - int(prep["b_h"].size) * elem_bytes
        est = (resident + 2 * (w_pad * w_pad * mm_bytes + w_pad * elem_bytes)
               + tile_bytes + tile_b * w_pad * elem_bytes)
    else:
        est = 2 * weight_bytes + tile_bytes   # 2x weights: safe if fallback double-buffers
    vmem_limit = int(min(max(2 * est, 16 * 2**20), vmem_budget))

    flops = 2 * grid_b * tile_b * (n_in * w_pad + n_hidden * w_pad * w_pad
                                   + w_pad * n_pad)
    bytes_accessed = int(batch * n_in * x_bytes + batch * n_pad * out_bytes
                         + weight_bytes * (grid_b if stream else 1))
    cost = pl.CostEstimate(flops=int(flops), transcendentals=0,
                           bytes_accessed=bytes_accessed)

    def call(single_buffer_weights):
        if not stream:
            kernel = _make_resident_kernel(n_hidden, elem_dtype)
            grid = (grid_b,)
            dims = ("parallel",)
            in_specs = [pl.BlockSpec((tile_b, n_in), lambda i: (i, 0))]
            in_specs += [_const_spec(tuple(a.shape), 1, single_buffer_weights)
                         for a in weight_args]
            out_specs = pl.BlockSpec((tile_b, n_pad), lambda i: (i, 0))
            scratch = []
        else:
            kernel = _make_streaming_kernel(elem_dtype)
            grid = (grid_b, n_hidden)
            dims = ("parallel", "arbitrary")
            in_specs = [
                pl.BlockSpec((tile_b, n_in), lambda i, l: (i, 0)),
                _const_spec(tuple(prep["w_in"].shape), 2, single_buffer_weights),
                _const_spec(tuple(prep["b_in"].shape), 2, single_buffer_weights),
                pl.BlockSpec((1, w_pad, w_pad), lambda i, l: (l, 0, 0)),
                pl.BlockSpec((1, 1, w_pad), lambda i, l: (l, 0, 0)),
                _const_spec(tuple(prep["w_out"].shape), 2, single_buffer_weights),
                _const_spec(tuple(prep["b_out"].shape), 2, single_buffer_weights),
            ]
            out_specs = pl.BlockSpec((tile_b, n_pad), lambda i, l: (i, 0))
            scratch = [pltpu.VMEM((tile_b, w_pad), elem_dtype)]

        return pl.pallas_call(
            kernel,
            out_shape=jax.ShapeDtypeStruct((batch, n_pad), out_dtype),
            grid_spec=pltpu.PrefetchScalarGridSpec(
                num_scalar_prefetch=0,
                grid=grid,
                in_specs=in_specs,
                out_specs=out_specs,
                scratch_shapes=scratch),
            compiler_params=pltpu.CompilerParams(
                dimension_semantics=dims,
                vmem_limit_bytes=vmem_limit),
            cost_estimate=cost,
        )(x, *weight_args)

    try:
        out = call(True)           # single-buffered resident weights
    except Exception:
        out = call(False)          # fallback: default (double) buffering

    return out[:batch, :n_out].astype(x.dtype)


# ----------------------------------------------------------------------------
# parameter init + references
# ----------------------------------------------------------------------------
def init_params(key, n_inputs, n_outputs, mlp_width, mlp_depth):
    """Deterministic init mirroring nn.Linear / nn.BatchNorm1d shapes."""
    def linear(key, fan_in, fan_out):
        k1, k2 = jax.random.split(key)
        bound = 1.0 / jnp.sqrt(fan_in)
        w = jax.random.uniform(k1, (fan_in, fan_out), jnp.float32, -bound, bound)
        b = jax.random.uniform(k2, (fan_out,), jnp.float32, -bound, bound)
        return w, b

    keys = jax.random.split(key, mlp_depth + 2)
    w_in, b_in = linear(keys[0], n_inputs, mlp_width)

    hiddens = []
    for i in range(mlp_depth - 2):
        kw, kg, kb, km, kv = jax.random.split(keys[1 + i], 5)
        w, b = linear(kw, mlp_width, mlp_width)
        hiddens.append(dict(
            w=w, b=b,
            gamma=1.0 + 0.1 * jax.random.normal(kg, (mlp_width,), jnp.float32),
            beta=0.1 * jax.random.normal(kb, (mlp_width,), jnp.float32),
            run_mean=0.1 * jax.random.normal(km, (mlp_width,), jnp.float32),
            run_var=1.0 + 0.1 * jnp.abs(jax.random.normal(kv, (mlp_width,), jnp.float32)),
        ))

    w_out, b_out = linear(keys[-1], mlp_width, n_outputs)
    return dict(w_in=w_in, b_in=b_in, hiddens=hiddens, w_out=w_out, b_out=b_out)


def mlp_forward_ref_f32(x, params):
    """Pure-JAX f32 reference (eval semantics, unfolded BN)."""
    h = x @ params["w_in"] + params["b_in"]
    h = jnp.maximum(h, 0.0)
    for hp in params["hiddens"]:
        h = h @ hp["w"] + hp["b"]
        h = (h - hp["run_mean"]) * jax.lax.rsqrt(hp["run_var"] + BN_EPS)
        h = h * hp["gamma"] + hp["beta"]
        h = jnp.maximum(h, 0.0)
    return h @ params["w_out"] + params["b_out"]


def mlp_forward_ref_mirror(x, params, matmul_dtype=jnp.bfloat16,
                           elem_dtype=jnp.float32, out_dtype=jnp.float32):
    """Mirrors the kernel math exactly: BN folded, matmul_dtype MXU operands,
    f32 accumulation, elem_dtype bias-add/ReLU, out_dtype output."""
    def lin_relu(h, w, b):
        h = jnp.dot(h.astype(matmul_dtype), w.astype(matmul_dtype),
                    preferred_element_type=jnp.float32)
        h = h.astype(elem_dtype) + b.astype(elem_dtype)
        return jnp.maximum(h, 0.0)

    h = lin_relu(x, params["w_in"], params["b_in"])
    for hp in params["hiddens"]:
        scale = hp["gamma"] * jax.lax.rsqrt(hp["run_var"] + BN_EPS)
        w_f = hp["w"] * scale[None, :]
        b_f = (hp["b"] - hp["run_mean"]) * scale + hp["beta"]
        h = lin_relu(h, w_f, b_f)
    y = jnp.dot(h.astype(matmul_dtype), params["w_out"].astype(matmul_dtype),
                preferred_element_type=jnp.float32) + params["b_out"]
    return y.astype(out_dtype)


# ----------------------------------------------------------------------------
# demo / checks
# ----------------------------------------------------------------------------
if __name__ == "__main__":
    # hparams: mlp_width=32, mlp_depth=4 (=> 2 hidden Linear+BN blocks), eval mode
    n_inputs, n_outputs = 16, 8
    mlp_width, mlp_depth = 32, 4
    batch = 50    # intentionally not a multiple of the batch tile

    key = jax.random.PRNGKey(0)
    kx, kp = jax.random.split(key)
    x = jax.random.normal(kx, (batch, n_inputs), jnp.float32)
    params = init_params(kp, n_inputs, n_outputs, mlp_width, mlp_depth)

    ref_f32 = mlp_forward_ref_f32(x, params)

    # 1) Resident path, f32 elementwise/output: only bf16 MXU operands differ
    #    from the module's f32 math -> tight check vs. the exact-math mirror.
    prep_f32 = prepare_params(params, elem_dtype=jnp.float32,
                              out_dtype=jnp.float32)
    out = jax.block_until_ready(mlp_apply(x, prep_f32))
    assert out.shape == (batch, n_outputs)
    ref_mirror = mlp_forward_ref_mirror(x, params, jnp.bfloat16,
                                        jnp.float32, jnp.float32)
    assert jnp.allclose(out, ref_mirror, atol=1e-3, rtol=1e-3)
    assert jnp.allclose(out, ref_f32, atol=5e-2, rtol=5e-2)

    # 2) Default path (generation-aware elementwise dtype, bf16 output
    #    writeback) vs. the plain f32 eval-mode semantics of the module.
    prep = prepare_params(params)
    out2 = jax.block_until_ready(mlp_apply(x, prep))
    assert out2.shape == (batch, n_outputs)
    assert jnp.allclose(out2.astype(jnp.float32), ref_f32, atol=5e-2, rtol=5e-2)

    # 3) Weight-streaming fallback (normally only for VMEM-exceeding models).
    out3 = jax.block_until_ready(mlp_apply(x, prep_f32, force_stream=True))
    assert jnp.allclose(out3, ref_mirror, atol=1e-3, rtol=1e-3)

    print("KERNEL_OK")
</pallas_src>

<mosaic_0001>
module attributes {stable_mosaic.version = 11 : i64} {
  func.func @kernel(%arg0: i32, %arg1: memref<32x16xf32, #tpu.memory_space<vmem>>, %arg2: memref<16x128xbf16, #tpu.memory_space<vmem>>, %arg3: memref<1x128xf32, #tpu.memory_space<vmem>>, %arg4: memref<2x128x128xbf16, #tpu.memory_space<vmem>>, %arg5: memref<2x1x128xf32, #tpu.memory_space<vmem>>, %arg6: memref<128x128xbf16, #tpu.memory_space<vmem>>, %arg7: memref<1x128xf32, #tpu.memory_space<vmem>>, %arg8: memref<32x128xf32, #tpu.memory_space<vmem>>) attributes {dimension_semantics = [#tpu.dimension_semantics<parallel>], iteration_bounds = array<i64: 2>, scalar_prefetch = 0 : i64, scratch_operands = 0 : i64, tpu.core_type = #tpu.core_type<tc>, window_params = [{transform_indices = @transform_0, window_bounds = array<i64: 32, 16>}, {pipeline_mode = #tpu.pipeline_mode<synchronous>, transform_indices = @transform_1, window_bounds = array<i64: 16, 128>}, {pipeline_mode = #tpu.pipeline_mode<synchronous>, transform_indices = @transform_2, window_bounds = array<i64: 1, 128>}, {pipeline_mode = #tpu.pipeline_mode<synchronous>, transform_indices = @transform_3, window_bounds = array<i64: 2, 128, 128>}, {pipeline_mode = #tpu.pipeline_mode<synchronous>, transform_indices = @transform_4, window_bounds = array<i64: 2, 1, 128>}, {pipeline_mode = #tpu.pipeline_mode<synchronous>, transform_indices = @transform_5, window_bounds = array<i64: 128, 128>}, {pipeline_mode = #tpu.pipeline_mode<synchronous>, transform_indices = @transform_6, window_bounds = array<i64: 1, 128>}, {transform_indices = @transform_7, window_bounds = array<i64: 32, 128>}]} {
    %c0 = arith.constant 0 : index
    %c0_0 = arith.constant 0 : index
    %0 = vector.load %arg1[%c0, %c0_0] : memref<32x16xf32, #tpu.memory_space<vmem>>, vector<32x16xf32>
    %c0_1 = arith.constant 0 : index
    %c0_2 = arith.constant 0 : index
    %1 = vector.load %arg2[%c0_1, %c0_2] : memref<16x128xbf16, #tpu.memory_space<vmem>>, vector<16x128xbf16>
    %c0_3 = arith.constant 0 : index
    %c0_4 = arith.constant 0 : index
    %2 = vector.load %arg3[%c0_3, %c0_4] : memref<1x128xf32, #tpu.memory_space<vmem>>, vector<1x128xf32>
    %3 = arith.truncf %0 : vector<32x16xf32> to vector<32x16xbf16>
    %cst = arith.constant dense<0.000000e+00> : vector<32x128xf32>
    %4 = tpu.matmul %3, %1, %cst {dimension_numbers = #tpu.dot_dimension_numbers<[1], [0], [0], [1], [0, 0, 1, 1], [], []>} : vector<32x16xbf16>, vector<16x128xbf16>, vector<32x128xf32> -> vector<32x128xf32>
    %5 = vector.broadcast %2 : vector<1x128xf32> to vector<32x128xf32>
    %6 = arith.addf %4, %5 : vector<32x128xf32>
    %cst_5 = arith.constant 0.000000e+00 : f32
    %7 = vector.broadcast %cst_5 : f32 to vector<32x128xf32>
    %8 = arith.maximumf %6, %7 : vector<32x128xf32>
    %c0_6 = arith.constant 0 : index
    %c0_7 = arith.constant 0 : index
    %c0_8 = arith.constant 0 : index
    %9 = vector.load %arg4[%c0_6, %c0_7, %c0_8] : memref<2x128x128xbf16, #tpu.memory_space<vmem>>, vector<1x128x128xbf16>
    %10 = vector.shape_cast %9 : vector<1x128x128xbf16> to vector<128x128xbf16>
    %c0_9 = arith.constant 0 : index
    %c0_10 = arith.constant 0 : index
    %c0_11 = arith.constant 0 : index
    %11 = vector.load %arg5[%c0_9, %c0_10, %c0_11] : memref<2x1x128xf32, #tpu.memory_space<vmem>>, vector<1x1x128xf32>
    %12 = vector.shape_cast %11 : vector<1x1x128xf32> to vector<1x128xf32>
    %13 = arith.truncf %8 : vector<32x128xf32> to vector<32x128xbf16>
    %cst_12 = arith.constant dense<0.000000e+00> : vector<32x128xf32>
    %14 = tpu.matmul %13, %10, %cst_12 {dimension_numbers = #tpu.dot_dimension_numbers<[1], [0], [0], [1], [0, 0, 1, 1], [], []>} : vector<32x128xbf16>, vector<128x128xbf16>, vector<32x128xf32> -> vector<32x128xf32>
    %15 = vector.broadcast %12 : vector<1x128xf32> to vector<32x128xf32>
    %16 = arith.addf %14, %15 : vector<32x128xf32>
    %cst_13 = arith.constant 0.000000e+00 : f32
    %17 = vector.broadcast %cst_13 : f32 to vector<32x128xf32>
    %18 = arith.maximumf %16, %17 : vector<32x128xf32>
    %c1 = arith.constant 1 : index
    %c0_14 = arith.constant 0 : index
    %c0_15 = arith.constant 0 : index
    %19 = vector.load %arg4[%c1, %c0_14, %c0_15] : memref<2x128x128xbf16, #tpu.memory_space<vmem>>, vector<1x128x128xbf16>
    %20 = vector.shape_cast %19 : vector<1x128x128xbf16> to vector<128x128xbf16>
    %c1_16 = arith.constant 1 : index
    %c0_17 = arith.constant 0 : index
    %c0_18 = arith.constant 0 : index
    %21 = vector.load %arg5[%c1_16, %c0_17, %c0_18] : memref<2x1x128xf32, #tpu.memory_space<vmem>>, vector<1x1x128xf32>
    %22 = vector.shape_cast %21 : vector<1x1x128xf32> to vector<1x128xf32>
    %23 = arith.truncf %18 : vector<32x128xf32> to vector<32x128xbf16>
    %cst_19 = arith.constant dense<0.000000e+00> : vector<32x128xf32>
    %24 = tpu.matmul %23, %20, %cst_19 {dimension_numbers = #tpu.dot_dimension_numbers<[1], [0], [0], [1], [0, 0, 1, 1], [], []>} : vector<32x128xbf16>, vector<128x128xbf16>, vector<32x128xf32> -> vector<32x128xf32>
    %25 = vector.broadcast %22 : vector<1x128xf32> to vector<32x128xf32>
    %26 = arith.addf %24, %25 : vector<32x128xf32>
    %cst_20 = arith.constant 0.000000e+00 : f32
    %27 = vector.broadcast %cst_20 : f32 to vector<32x128xf32>
    %28 = arith.maximumf %26, %27 : vector<32x128xf32>
    %29 = arith.truncf %28 : vector<32x128xf32> to vector<32x128xbf16>
    %c0_21 = arith.constant 0 : index
    %c0_22 = arith.constant 0 : index
    %30 = vector.load %arg6[%c0_21, %c0_22] : memref<128x128xbf16, #tpu.memory_space<vmem>>, vector<128x128xbf16>
    %cst_23 = arith.constant dense<0.000000e+00> : vector<32x128xf32>
    %31 = tpu.matmul %29, %30, %cst_23 {dimension_numbers = #tpu.dot_dimension_numbers<[1], [0], [0], [1], [0, 0, 1, 1], [], []>} : vector<32x128xbf16>, vector<128x128xbf16>, vector<32x128xf32> -> vector<32x128xf32>
    %c0_24 = arith.constant 0 : index
    %c0_25 = arith.constant 0 : index
    %32 = vector.load %arg7[%c0_24, %c0_25] : memref<1x128xf32, #tpu.memory_space<vmem>>, vector<1x128xf32>
    %33 = vector.broadcast %32 : vector<1x128xf32> to vector<32x128xf32>
    %34 = arith.addf %31, %33 : vector<32x128xf32>
    %c0_26 = arith.constant 0 : index
    %c0_27 = arith.constant 0 : index
    %35 = vector.load %arg8[%c0_26, %c0_27] : memref<32x128xf32, #tpu.memory_space<vmem>>, vector<32x128xf32>
    tpu.vector_store %arg8[%c0_26, %c0_27], %34 {strides = array<i32>} : memref<32x128xf32, #tpu.memory_space<vmem>>, vector<32x128xf32>,
    return
  }
  func.func @transform_0(%arg0: i32) -> (i32, i32) {
    %c0_i32 = arith.constant 0 : i32
    %c0_i32_0 = arith.constant 0 : i32
    return %arg0, %c0_i32 : i32, i32
  }
  func.func @transform_1(%arg0: i32) -> (i32, i32) {
    %c0_i32 = arith.constant 0 : i32
    %c0_i32_0 = arith.constant 0 : i32
    %c0_i32_1 = arith.constant 0 : i32
    return %c0_i32, %c0_i32_0 : i32, i32
  }
  func.func @transform_2(%arg0: i32) -> (i32, i32) {
    %c0_i32 = arith.constant 0 : i32
    %c0_i32_0 = arith.constant 0 : i32
    %c0_i32_1 = arith.constant 0 : i32
    return %c0_i32, %c0_i32_0 : i32, i32
  }
  func.func @transform_3(%arg0: i32) -> (i32, i32, i32) {
    %c0_i32 = arith.constant 0 : i32
    %c0_i32_0 = arith.constant 0 : i32
    %c0_i32_1 = arith.constant 0 : i32
    %c0_i32_2 = arith.constant 0 : i32
    return %c0_i32, %c0_i32_0, %c0_i32_1 : i32, i32, i32
  }
  func.func @transform_4(%arg0: i32) -> (i32, i32, i32) {
    %c0_i32 = arith.constant 0 : i32
    %c0_i32_0 = arith.constant 0 : i32
    %c0_i32_1 = arith.constant 0 : i32
    %c0_i32_2 = arith.constant 0 : i32
    return %c0_i32, %c0_i32_0, %c0_i32_1 : i32, i32, i32
  }
  func.func @transform_5(%arg0: i32) -> (i32, i32) {
    %c0_i32 = arith.constant 0 : i32
    %c0_i32_0 = arith.constant 0 : i32
    %c0_i32_1 = arith.constant 0 : i32
    return %c0_i32, %c0_i32_0 : i32, i32
  }
  func.func @transform_6(%arg0: i32) -> (i32, i32) {
    %c0_i32 = arith.constant 0 : i32
    %c0_i32_0 = arith.constant 0 : i32
    %c0_i32_1 = arith.constant 0 : i32
    return %c0_i32, %c0_i32_0 : i32, i32
  }
  func.func @transform_7(%arg0: i32) -> (i32, i32) {
    %c0_i32 = arith.constant 0 : i32
    %c0_i32_0 = arith.constant 0 : i32
    return %arg0, %c0_i32 : i32, i32
  }
}

module attributes {stable_mosaic.version = 11 : i64} {
  func.func @kernel(%arg0: i32, %arg1: memref<32x16xf32, #tpu.memory_space<vmem>>, %arg2: memref<16x128xbf16, #tpu.memory_space<vmem>>, %arg3: memref<1x128xf32, #tpu.memory_space<vmem>>, %arg4: memref<2x128x128xbf16, #tpu.memory_space<vmem>>, %arg5: memref<2x1x128xf32, #tpu.memory_space<vmem>>, %arg6: memref<128x128xbf16, #tpu.memory_space<vmem>>, %arg7: memref<1x128xf32, #tpu.memory_space<vmem>>, %arg8: memref<32x128xf32, #tpu.memory_space<vmem>>) attributes {dimension_semantics = [#tpu.dimension_semantics<parallel>], iteration_bounds = array<i64: 2>, scalar_prefetch = 0 : i64, scratch_operands = 0 : i64, tpu.core_type = #tpu.core_type<tc>, window_params = [{transform_indices = @transform_0, window_bounds = array<i64: 32, 16>}, {pipeline_mode = #tpu.pipeline_mode<synchronous>, transform_indices = @transform_1, window_bounds = array<i64: 16, 128>}, {pipeline_mode = #tpu.pipeline_mode<synchronous>, transform_indices = @transform_2, window_bounds = array<i64: 1, 128>}, {pipeline_mode = #tpu.pipeline_mode<synchronous>, transform_indices = @transform_3, window_bounds = array<i64: 2, 128, 128>}, {pipeline_mode = #tpu.pipeline_mode<synchronous>, transform_indices = @transform_4, window_bounds = array<i64: 2, 1, 128>}, {pipeline_mode = #tpu.pipeline_mode<synchronous>, transform_indices = @transform_5, window_bounds = array<i64: 128, 128>}, {pipeline_mode = #tpu.pipeline_mode<synchronous>, transform_indices = @transform_6, window_bounds = array<i64: 1, 128>}, {transform_indices = @transform_7, window_bounds = array<i64: 32, 128>}]} {
    %c0 = arith.constant 0 : index
    %c0_0 = arith.constant 0 : index
    %0 = vector.load %arg1[%c0, %c0_0] : memref<32x16xf32, #tpu.memory_space<vmem>>, vector<32x16xf32>
    %c0_1 = arith.constant 0 : index
    %c0_2 = arith.constant 0 : index
    %1 = vector.load %arg2[%c0_1, %c0_2] : memref<16x128xbf16, #tpu.memory_space<vmem>>, vector<16x128xbf16>
    %c0_3 = arith.constant 0 : index
    %c0_4 = arith.constant 0 : index
    %2 = vector.load %arg3[%c0_3, %c0_4] : memref<1x128xf32, #tpu.memory_space<vmem>>, vector<1x128xf32>
    %3 = arith.truncf %0 : vector<32x16xf32> to vector<32x16xbf16>
    %cst = arith.constant dense<0.000000e+00> : vector<32x128xf32>
    %4 = tpu.matmul %3, %1, %cst {dimension_numbers = #tpu.dot_dimension_numbers<[1], [0], [0], [1], [0, 0, 1, 1], [], []>} : vector<32x16xbf16>, vector<16x128xbf16>, vector<32x128xf32> -> vector<32x128xf32>
    %5 = vector.broadcast %2 : vector<1x128xf32> to vector<32x128xf32>
    %6 = arith.addf %4, %5 : vector<32x128xf32>
    %cst_5 = arith.constant 0.000000e+00 : f32
    %7 = vector.broadcast %cst_5 : f32 to vector<32x128xf32>
    %8 = arith.maximumf %6, %7 : vector<32x128xf32>
    %c0_6 = arith.constant 0 : index
    %c0_7 = arith.constant 0 : index
    %c0_8 = arith.constant 0 : index
    %9 = vector.load %arg4[%c0_6, %c0_7, %c0_8] : memref<2x128x128xbf16, #tpu.memory_space<vmem>>, vector<1x128x128xbf16>
    %10 = vector.shape_cast %9 : vector<1x128x128xbf16> to vector<128x128xbf16>
    %c0_9 = arith.constant 0 : index
    %c0_10 = arith.constant 0 : index
    %c0_11 = arith.constant 0 : index
    %11 = vector.load %arg5[%c0_9, %c0_10, %c0_11] : memref<2x1x128xf32, #tpu.memory_space<vmem>>, vector<1x1x128xf32>
    %12 = vector.shape_cast %11 : vector<1x1x128xf32> to vector<1x128xf32>
    %13 = arith.truncf %8 : vector<32x128xf32> to vector<32x128xbf16>
    %cst_12 = arith.constant dense<0.000000e+00> : vector<32x128xf32>
    %14 = tpu.matmul %13, %10, %cst_12 {dimension_numbers = #tpu.dot_dimension_numbers<[1], [0], [0], [1], [0, 0, 1, 1], [], []>} : vector<32x128xbf16>, vector<128x128xbf16>, vector<32x128xf32> -> vector<32x128xf32>
    %15 = vector.broadcast %12 : vector<1x128xf32> to vector<32x128xf32>
    %16 = arith.addf %14, %15 : vector<32x128xf32>
    %cst_13 = arith.constant 0.000000e+00 : f32
    %17 = vector.broadcast %cst_13 : f32 to vector<32x128xf32>
    %18 = arith.maximumf %16, %17 : vector<32x128xf32>
    %c1 = arith.constant 1 : index
    %c0_14 = arith.constant 0 : index
    %c0_15 = arith.constant 0 : index
    %19 = vector.load %arg4[%c1, %c0_14, %c0_15] : memref<2x128x128xbf16, #tpu.memory_space<vmem>>, vector<1x128x128xbf16>
    %20 = vector.shape_cast %19 : vector<1x128x128xbf16> to vector<128x128xbf16>
    %c1_16 = arith.constant 1 : index
    %c0_17 = arith.constant 0 : index
    %c0_18 = arith.constant 0 : index
    %21 = vector.load %arg5[%c1_16, %c0_17, %c0_18] : memref<2x1x128xf32, #tpu.memory_space<vmem>>, vector<1x1x128xf32>
    %22 = vector.shape_cast %21 : vector<1x1x128xf32> to vector<1x128xf32>
    %23 = arith.truncf %18 : vector<32x128xf32> to vector<32x128xbf16>
    %cst_19 = arith.constant dense<0.000000e+00> : vector<32x128xf32>
    %24 = tpu.matmul %23, %20, %cst_19 {dimension_numbers = #tpu.dot_dimension_numbers<[1], [0], [0], [1], [0, 0, 1, 1], [], []>} : vector<32x128xbf16>, vector<128x128xbf16>, vector<32x128xf32> -> vector<32x128xf32>
    %25 = vector.broadcast %22 : vector<1x128xf32> to vector<32x128xf32>
    %26 = arith.addf %24, %25 : vector<32x128xf32>
    %cst_20 = arith.constant 0.000000e+00 : f32
    %27 = vector.broadcast %cst_20 : f32 to vector<32x128xf32>
    %28 = arith.maximumf %26, %27 : vector<32x128xf32>
    %29 = arith.truncf %28 : vector<32x128xf32> to vector<32x128xbf16>
    %c0_21 = arith.constant 0 : index
    %c0_22 = arith.constant 0 : index
    %30 = vector.load %arg6[%c0_21, %c0_22] : memref<128x128xbf16, #tpu.memory_space<vmem>>, vector<128x128xbf16>
    %cst_23 = arith.constant dense<0.000000e+00> : vector<32x128xf32>
    %31 = tpu.matmul %29, %30, %cst_23 {dimension_numbers = #tpu.dot_dimension_numbers<[1], [0], [0], [1], [0, 0, 1, 1], [], []>} : vector<32x128xbf16>, vector<128x128xbf16>, vector<32x128xf32> -> vector<32x128xf32>
    %c0_24 = arith.constant 0 : index
    %c0_25 = arith.constant 0 : index
    %32 = vector.load %arg7[%c0_24, %c0_25] : memref<1x128xf32, #tpu.memory_space<vmem>>, vector<1x128xf32>
    %33 = vector.broadcast %32 : vector<1x128xf32> to vector<32x128xf32>
    %34 = arith.addf %31, %33 : vector<32x128xf32>
    %c0_26 = arith.constant 0 : index
    %c0_27 = arith.constant 0 : index
    %35 = vector.load %arg8[%c0_26, %c0_27] : memref<32x128xf32, #tpu.memory_space<vmem>>, vector<32x128xf32>
    tpu.vector_store %arg8[%c0_26, %c0_27], %34 {strides = array<i32>} : memref<32x128xf32, #tpu.memory_space<vmem>>, vector<32x128xf32>,
    return
  }
  func.func @transform_0(%arg0: i32) -> (i32, i32) {
    %c0_i32 = arith.constant 0 : i32
    %c0_i32_0 = arith.constant 0 : i32
    return %arg0, %c0_i32 : i32, i32
  }
  func.func @transform_1(%arg0: i32) -> (i32, i32) {
    %c0_i32 = arith.constant 0 : i32
    %c0_i32_0 = arith.constant 0 : i32
    %c0_i32_1 = arith.constant 0 : i32
    return %c0_i32, %c0_i32_0 : i32, i32
  }
  func.func @transform_2(%arg0: i32) -> (i32, i32) {
    %c0_i32 = arith.constant 0 : i32
    %c0_i32_0 = arith.constant 0 : i32
    %c0_i32_1 = arith.constant 0 : i32
    return %c0_i32, %c0_i32_0 : i32, i32
  }
  func.func @transform_3(%arg0: i32) -> (i32, i32, i32) {
    %c0_i32 = arith.constant 0 : i32
    %c0_i32_0 = arith.constant 0 : i32
    %c0_i32_1 = arith.constant 0 : i32
    %c0_i32_2 = arith.constant 0 : i32
    return %c0_i32, %c0_i32_0, %c0_i32_1 : i32, i32, i32
  }
  func.func @transform_4(%arg0: i32) -> (i32, i32, i32) {
    %c0_i32 = arith.constant 0 : i32
    %c0_i32_0 = arith.constant 0 : i32
    %c0_i32_1 = arith.constant 0 : i32
    %c0_i32_2 = arith.constant 0 : i32
    return %c0_i32, %c0_i32_0, %c0_i32_1 : i32, i32, i32
  }
  func.func @transform_5(%arg0: i32) -> (i32, i32) {
    %c0_i32 = arith.constant 0 : i32
    %c0_i32_0 = arith.constant 0 : i32
    %c0_i32_1 = arith.constant 0 : i32
    return %c0_i32, %c0_i32_0 : i32, i32
  }
  func.func @transform_6(%arg0: i32) -> (i32, i32) {
    %c0_i32 = arith.constant 0 : i32
    %c0_i32_0 = arith.constant 0 : i32
    %c0_i32_1 = arith.constant 0 : i32
    return %c0_i32, %c0_i32_0 : i32, i32
  }
  func.func @transform_7(%arg0: i32) -> (i32, i32) {
    %c0_i32 = arith.constant 0 : i32
    %c0_i32_0 = arith.constant 0 : i32
    return %arg0, %c0_i32 : i32, i32
  }
}

</mosaic_0001>

<bundles_post_ra>
// kernel: tpu_custom_call.1
= control target key start
LH: loop header
LB: loop body
LE: loop exit
PB: predicated region body
PF: predicated region fallthrough
CT: control target
= control target key end

     0   :  { %12 = vsyncpa [#allocation3], 0  ;;  %s1414_s0 = inlined_call_operand.vmem [shape: f32[50,16], index: 0, kind: input, shape index: {}]   ;;  %s1415_s1 = inlined_call_operand.vmem [shape: bf16[16,128], index: 1, kind: input, shape index: {}]   ;;  %s1416_s2 = inlined_call_operand.vmem [shape: f32[1,128], index: 2, kind: input, shape index: {}]   ;;  %s1417_s3 = inlined_call_operand.hbm [shape: bf16[2,128,128], index: 3, kind: input, shape index: {}]   ;;  %s1418_s4 = inlined_call_operand.vmem [shape: f32[2,1,128], index: 4, kind: input, shape index: {}]   ;;  %s1419_s5 = inlined_call_operand.vmem [shape: bf16[128,128], index: 5, kind: input, shape index: {}]   ;;  %s1420_s6 = inlined_call_operand.vmem [shape: f32[1,128], index: 6, kind: input, shape index: {}]   ;;  %s1421_s7 = inlined_call_operand.hbm [shape: f32[50,128], index: 7, kind: output, shape index: {}]  }
   0x1   :  { %13 = vsyncpa [#allocation4], 0 }
   0x2   :  { %15 = vsyncpa [#allocation4 + $0x1], 0  ;;  %s1241_s24 = smov 0   ;;  %s1243_s25 = smov 0  }
   0x3   :  { %s1245_s26 = smov 0   ;;  %s1247_s27 = smov 0  }
   0x4 LB: > { %s1262_s28 = sadd.s32 4294967295, %s1193_s27   ;;  %s875_s29 = sadd.s32 4294967294, %s1193_s27   ;;  %s1193_s27 = sphi %s1247_s27, %s1429_s27   ;;  %s1189_s26 = sphi %s1245_s26, %s1428_s26   ;;  %s1185_s25 = sphi %s1243_s25, %s1427_s25   ;;  %s1181_s24 = sphi %s1241_s24, %s1426_s24  }
   0x5   : > { %s1266_s30 = sadd.s32 1, %s1193_s27   ;;  %s180_s8 = sadd.s32 1, %s1189_s26 }
   0x6   : > { %s177_s9 = ssub.s32 %s1193_s27, %s1266_s30  ;;  %p190_p0 = scmp.ne.s32.totalorder %s1189_s26, %s1185_s25 }
   0x7   : > { %p178_p1 = scmp.eq.s32.totalorder %s177_s9, 0  ;;  %p191_p2 = scmp.eq.s32.totalorder %s1262_s28, 1 }
   0x8   : > { %p196_p3 = scmp.ne.s32.totalorder %s1185_s25, %s1181_s24  ;;  %p197_p4 = scmp.eq.s32.totalorder %s875_s29, 1 }
   0x9   : > { %s1277_s10 = scalar_select %p178_p1, %s1189_s26, %s180_s8  }
   0xa   : > { %p1279_p5 = por %p191_p2, %p190_p0  ;;  %p1283_p6 = por %p197_p4, %p196_p3 }
   0xb   : > { %p876_p7 = scmp.ge.s32.totalorder %s1193_s27, 1  ;;  %p204_p8 = scmp.lt.s32.totalorder %s1193_s27, 3 }
   0xc   : > { %s1423_s12 = scalar_select %p1283_p6, 1, 0 }
   0xd   : > { %p1038_p9 = scmp.eq.s32.totalorder %s1262_s28, 0  ;;  %p1290_p10 = pnand %p876_p7, %p204_p8 }
   0xe   : > { %s1195_s14 = smov [#allocation2]  }
   0xf   : > { %s222_s15 = sshll.u32 %s1195_s14, 4  ;;  %p1030_p11 = pneg %p1290_p10  ;;  %s223_s15 = int_to_ptr.vmem [resolvable:$true] %s222_s15 }
  0x10   : > { %s1114_s16 = scalar_lea.vmem %s223_s15, 2048  ;;  %p1122_p3 = scmp.lt.s32.totalorder %s223_s15, %s223_s15 }
  0x11   : > { %p1031_p12 = pnand %p1038_p9, %p1030_p11  ;;  %p1115_p0 = scmp.ne.s32.totalorder %s223_s15, %s1114_s16 }
  0x12   : > { %p1123_p4 = scmp.lt.s32.totalorder %s1114_s16, %s1114_s16 }
  0x13   : > { %p1105_p13 = pneg %p1031_p12 }
  0x14   : > { %p1124_p6 = por %p1123_p4, %p1122_p3 }
  0x15   : > { %p1117_p1 = pnand %p1115_p0, %p1105_p13 }
  0x17   : > { %p1118_p2 = pneg %p1117_p1 }
  0x19   : > { %p1125_p7 = pnand %p1124_p6, %p1118_p2 }
  0x1b   : > { %1128 = shalt.err (!%p1125_p7)
}
  0x1c   : > { %s1196_s17 = smov 64   ;;  %s1197_s18 = smov 4  }
  0x1d   : > { %1033 = dma.hbm_to_vmem [thread:$0]  (!%p1031_p12), %s1417_s3, 2048, %s223_s15, [#allocation3], %s1196_s17, %s1196_s17, %s1197_s18  }
  0x1e   : > { %264 = sbr.rel (%p1290_p10) target bundleno = 894 (0x37e), region = 48 }
  0x23   : > { %1172 = dma.done.wait (%p1038_p9), [#allocation3], 2048  }
  0x24   : > { %1174 = vsyncadd (%p1038_p9), [#allocation3], 4294965248  ;;  %s1308_s21 = sshll.u32 %s1262_s28, 2  ;;  %v1078_v0 = vld [vmem:[%s1415_s1] sm:$0xff]   ;;  %vm341_vm0 = vcmask 130048   ;;  %v1079_v7 = vld [vmem:[#allocation2 + $0x38] sm:$0xff]  }
  0x25   : > { %p305_p6 = scmp.lt.s32.totalorder %s1308_s21, 6  ;;  %959 = vmatprep.subr.bf16.mxu0 %v1078_v0  ;;  %v1080_v8 = vld [vmem:[#allocation2 + $0x30] sm:$0xff]   ;;  %965 = vmatprep.subr.bf16.mxu1 %v1079_v7  ;;  %v1081_v9 = vld [vmem:[#allocation2 + $0x28] sm:$0xff]   ;;  %v1082_v10 = vld [vmem:[#allocation2 + $0x20] sm:$0xff]   ;;  %s297_s8 = sand.u32 1, %s1185_s25  }
  0x26   : > { %960 = vmatpush3.bf16.msra.mxu0 %v1078_v0  ;;  %966 = vmatpush3.bf16.msra.mxu1 %v1079_v7  ;;  %v1083_v11 = vld [vmem:[#allocation2 + $0x18] sm:$0xff]   ;;  %v1084_v12 = vld [vmem:[#allocation2 + $0x10] sm:$0xff]   ;;  %v1085_v13 = vld [vmem:[#allocation2 + $0x8] sm:$0xff]   ;;  %s1355_s16 = scalar_lea.sflag [#allocation4], %s297_s8  ;;  %s790_s17 = ssub.s32 (%p1279_p5), 7, %s1308_s21 }
  0x27   : > { %s306_s22 = scalar_select %p305_p6, %s1308_s21, 6  ;;  %967 = vmatprep.subr.bf16.mxu1 %v1080_v8  ;;  %v1086_v14 = vld [vmem:[#allocation2] sm:$0xff]   ;;  %v1087_v15 = vld [vmem:[#allocation2 + $0x78] sm:$0xff]   ;;  %v1088_v16 = vld [vmem:[#allocation2 + $0x70] sm:$0xff]  }
  0x28   : > { %985 = vmatprep.subr.bf16.mxu0 %v1087_v15  ;;  %v1089_v17 = vld [vmem:[#allocation2 + $0x68] sm:$0xff]   ;;  %v1090_v18 = vld [vmem:[#allocation2 + $0x60] sm:$0xff]   ;;  %v1091_v19 = vld [vmem:[#allocation2 + $0x58] sm:$0xff]   ;;  %p791_p8 = scmp.lt.s32.totalorder (%p1279_p5), %s790_s17, 4 }
  0x29   : > { %s883_s23 = sshll.u32 %s306_s22, 3  ;;  %v884_v22 = vld [vmem:[%s1416_s2] ss:$0 sm:$0xff]  ;;  %v1092_v35 = vld [vmem:[#allocation2 + $0x50] sm:$0xff]   ;;  %v1093_v36 = vld [vmem:[#allocation2 + $0x48] sm:$0xff]  }
  0x2a   : > { %s308_s9 = scalar_lea.vmem %s1414_s0, %s883_s23  ;;  %968 = vmatpush3.bf16.msra.mxu1 %v1080_v8  ;;  %v1094_v37 = vld [vmem:[#allocation2 + $0x40] sm:$0xff]   ;;  %v1095_v38 = vld [vmem:[%s1419_s5 + $0x38] sm:$0xff]   ;;  %v1096_v39 = vld [vmem:[%s1419_s5 + $0x30] sm:$0xff]  }
  0x2b   : > { %v320_v1 = vld [vmem:[%s308_s9] sm:$0xff]  ;;  %v321_v2 = vld [vmem:[%s308_s9 + $0x8] sm:$0xff]  ;;  %v322_v3 = vld [vmem:[%s308_s9 + $0x10] sm:$0xff]  ;;  %969 = vmatprep.subr.bf16.mxu1 %v1081_v9 }
  0x2c   : > { %v327_v4 = vpack.c.bf16 %v321_v2, %v320_v1  ;;  %v323_v5 = vld [vmem:[%s308_s9 + $0x18] sm:$0xff]  ;;  %v1097_v40 = vld [vmem:[%s1419_s5 + $0x28] sm:$0xff]   ;;  %v1098_v41 = vld [vmem:[%s1419_s5 + $0x20] sm:$0xff]   ;;  %s881_s9 = sshll.u32 %s297_s8, 5 }
  0x2d   : > { %v328_v6 = vpack.c.bf16 %v323_v5, %v322_v3  ;;  %v1099_v42 = vld [vmem:[%s1419_s5 + $0x18] sm:$0xff]   ;;  %v888_v45 = vld [vmem:[%s1418_s4] ss:$0 sm:$0xff]  ;;  %v1100_v58 = vld [vmem:[%s1419_s5 + $0x10] sm:$0xff]   ;;  %s299_s15 = scalar_lea.vmem [#allocation5], %s881_s9 }
  0x2e   : > { %961 = vmatprep.mubr.msk.bf16.mxu0 %vm341_vm0, %v327_v4  ;;  %970 = vmatpush3.bf16.msra.mxu1 %v1081_v9  ;;  %v1101_v59 = vld [vmem:[%s1419_s5 + $0x8] sm:$0xff]   ;;  %v1102_v60 = vld [vmem:[%s1419_s5] sm:$0xff]  }
  0x2f   : > { %962 = vmatmul.mubr.msk.bf16.vlgmr.msra.gmra.mxu0 %vm341_vm0, %v328_v6  ;;  %971 = vmatprep.subr.bf16.mxu1 %v1082_v10  ;;  %v898_v63 = vld [vmem:[%s1418_s4 + $0x1] ss:$0 sm:$0xff] }
  0x30   : > { %986 = vmatpush3.bf16.msra.mxu0 %v1087_v15 }
  0x31   : > { %987 = vmatprep.subr.bf16.mxu0 %v1088_v16 }
  0x32   : > { %972 = vmatpush3.bf16.msra.mxu1 %v1082_v10 }
  0x33   : > { %973 = vmatprep.subr.bf16.mxu1 %v1083_v11 }
  0x34   : > { %988 = vmatpush3.bf16.msra.mxu0 %v1088_v16 }
  0x35   : > { %989 = vmatprep.subr.bf16.mxu0 %v1089_v17 }
  0x36   : > { %974 = vmatpush3.bf16.msra.mxu1 %v1083_v11 }
  0x37   : > { %975 = vmatprep.subr.bf16.mxu1 %v1084_v12 }
  0x38   : > { %990 = vmatpush3.bf16.msra.mxu0 %v1089_v17 }
  0x39   : > { %991 = vmatprep.subr.bf16.mxu0 %v1090_v18 }
  0x3a   : > { %976 = vmatpush3.bf16.msra.mxu1 %v1084_v12  ;;  %v907_v12 = vld [vmem:[%s1420_s6] ss:$0 sm:$0xff] }
  0x3b   : > { %977 = vmatprep.subr.bf16.mxu1 %v1085_v13 }
  0x3c   : > { %992 = vmatpush3.bf16.msra.mxu0 %v1090_v18 }
  0x3d   : > { %993 = vmatprep.subr.bf16.mxu0 %v1091_v19 }
  0x3e   : > { %978 = vmatpush3.bf16.msra.mxu1 %v1085_v13 }
  0x3f   : > { %979 = vmatprep.subr.bf16.mxu1 %v1086_v14 }
  0x40   : > { %994 = vmatpush3.bf16.msra.mxu0 %v1091_v19 }
  0x41   : > { %995 = vmatprep.subr.bf16.mxu0 %v1092_v35 }
  0x42   : > { %980 = vmatpush3.bf16.msra.mxu1 %v1086_v14 }
  0x43   : > { %1005 = vmatprep.subr.bf16.mxu1 %v1095_v38 }
  0x44   : > { %996 = vmatpush3.bf16.msra.mxu0 %v1092_v35 }
  0x45   : > { %997 = vmatprep.subr.bf16.mxu0 %v1093_v36 }
  0x48   : > { %998 = vmatpush3.bf16.msra.mxu0 %v1093_v36 }
  0x49   : > { %999 = vmatprep.subr.bf16.mxu0 %v1094_v37 }
  0x4c   : > { %1000 = vmatpush3.bf16.msra.mxu0 %v1094_v37 }
  0xef   : > { %v963_v20 = vpop.f32.mrf.mxu0 }
  0xf0   : > { %v391_v26 = vadd.f32 %v963_v20, %v884_v22 }
  0xf1   : > { %v382_v21 = vpop.f32.mrf.mxu0 }
  0xf2   : > { %v383_v24 = vadd.f32 %v884_v22, %v382_v21  ;;  %v399_v32 = vmax.f32 %v391_v26, 0.0 }
  0xf3   : > { %v964_v23 = vpop.f32.mrf.mxu0 }
  0xf4   : > { %v394_v25 = vadd.f32 %v964_v23, %v884_v22  ;;  %v397_v30 = vmax.f32 %v383_v24, 0.0 }
  0xf5   : > { %v385_v27 = vpop.f32.mrf.mxu0 }
  0xf6   : > { %v386_v28 = vadd.f32 %v884_v22, %v385_v27  ;;  %v400_v29 = vmax.f32 %v394_v25, 0.0 }
  0xf8   : > { %v398_v31 = vmax.f32 %v386_v28, 0.0  ;;  %v419_v34 = vpack.c.bf16 %v400_v29, %v399_v32 }
  0xfa   : > { %v418_v33 = vpack.c.bf16 %v398_v31, %v397_v30 }
  0xfc   : > { %981 = vmatprep.mubr.bf16.mxu1 %v418_v33 }
  0xfd   : > { %982 = vmatmul.mubr.bf16.vlgmr.msra.gmra.mxu1 %v419_v34 }
  0xfe   : > { %1006 = vmatpush3.bf16.msra.mxu1 %v1095_v38 }
  0xff   : > { %1007 = vmatprep.subr.bf16.mxu1 %v1096_v39 }
 0x102   : > { %1008 = vmatpush3.bf16.msra.mxu1 %v1096_v39 }
 0x103   : > { %1009 = vmatprep.subr.bf16.mxu1 %v1097_v40 }
 0x106   : > { %1010 = vmatpush3.bf16.msra.mxu1 %v1097_v40 }
 0x107   : > { %1011 = vmatprep.subr.bf16.mxu1 %v1098_v41 }
 0x10a   : > { %1012 = vmatpush3.bf16.msra.mxu1 %v1098_v41 }
 0x10b   : > { %1013 = vmatprep.subr.bf16.mxu1 %v1099_v42 }
 0x10e   : > { %1014 = vmatpush3.bf16.msra.mxu1 %v1099_v42 }
 0x10f   : > { %1015 = vmatprep.subr.bf16.mxu1 %v1100_v58 }
 0x112   : > { %1016 = vmatpush3.bf16.msra.mxu1 %v1100_v58 }
 0x113   : > { %1017 = vmatprep.subr.bf16.mxu1 %v1101_v59 }
 0x116   : > { %1018 = vmatpush3.bf16.msra.mxu1 %v1101_v59 }
 0x117   : > { %1019 = vmatprep.subr.bf16.mxu1 %v1102_v60 }
 0x11a   : > { %1020 = vmatpush3.bf16.msra.mxu1 %v1102_v60 }
 0x1bd   : > { %v983_v43 = vpop.f32.mrf.mxu1 }
 0x1be   : > { %v517_v49 = vadd.f32 %v983_v43, %v888_v45 }
 0x1bf   : > { %v508_v44 = vpop.f32.mrf.mxu1 }
 0x1c0   : > { %v509_v47 = vadd.f32 %v888_v45, %v508_v44  ;;  %v525_v55 = vmax.f32 %v517_v49, 0.0 }
 0x1c1   : > { %v984_v46 = vpop.f32.mrf.mxu1 }
 0x1c2   : > { %v520_v48 = vadd.f32 %v984_v46, %v888_v45  ;;  %v523_v53 = vmax.f32 %v509_v47, 0.0 }
 0x1c3   : > { %v511_v50 = vpop.f32.mrf.mxu1 }
 0x1c4   : > { %v512_v51 = vadd.f32 %v888_v45, %v511_v50  ;;  %v526_v52 = vmax.f32 %v520_v48, 0.0 }
 0x1c6   : > { %v524_v54 = vmax.f32 %v512_v51, 0.0  ;;  %v547_v57 = vpack.c.bf16 %v526_v52, %v525_v55 }
 0x1c8   : > { %v546_v56 = vpack.c.bf16 %v524_v54, %v523_v53 }
 0x1ca   : > { %1001 = vmatprep.mubr.bf16.mxu0 %v546_v56 }
 0x1cb   : > { %1002 = vmatmul.mubr.bf16.vlgmr.msra.gmra.mxu0 %v547_v57 }
 0x28b   : > { %v1003_v61 = vpop.f32.mrf.mxu0 }
 0x28c   : > { %v645_v3 = vadd.f32 %v1003_v61, %v898_v63 }
 0x28d   : > { %v636_v62 = vpop.f32.mrf.mxu0 }
 0x28e   : > { %v637_v1 = vadd.f32 %v898_v63, %v636_v62  ;;  %v653_v9 = vmax.f32 %v645_v3, 0.0 }
 0x28f   : > { %v1004_v0 = vpop.f32.mrf.mxu0 }
 0x290   : > { %v648_v2 = vadd.f32 %v1004_v0, %v898_v63  ;;  %v651_v7 = vmax.f32 %v637_v1, 0.0 }
 0x291   : > { %v639_v4 = vpop.f32.mrf.mxu0 }
 0x292   : > { %v640_v5 = vadd.f32 %v898_v63, %v639_v4  ;;  %v654_v6 = vmax.f32 %v648_v2, 0.0 }
 0x294   : > { %v652_v8 = vmax.f32 %v640_v5, 0.0  ;;  %v656_v11 = vpack.c.bf16 %v654_v6, %v653_v9 }
 0x296   : > { %v655_v10 = vpack.c.bf16 %v652_v8, %v651_v7 }
 0x298   : > { %1021 = vmatprep.mubr.bf16.mxu1 %v655_v10 }
 0x299   : > { %1022 = vmatmul.mubr.bf16.vlgmr.msra.gmra.mxu1 %v656_v11 }
 0x359   : > { %v1023_v13 = vpop.f32.mrf.mxu1 }
 0x35a   : > { %v771_v14 = vadd.f32 %v1023_v13, %v907_v12 }
 0x35b   : > { %v762_v15 = vpop.f32.mrf.mxu1 }
 0x35c   : > { %779 = vst [vmem:[%s299_s15 + $0x10] sm:$0xff] %v771_v14  ;;  %v763_v16 = vadd.f32 %v907_v12, %v762_v15 }
 0x35d   : > { %v1024_v17 = vpop.f32.mrf.mxu1 }
 0x35e   : > { %777 = vst [vmem:[%s299_s15] sm:$0xff] %v763_v16  ;;  %v774_v18 = vadd.f32 %v1024_v17, %v907_v12  ;;  %788 = sbr.rel (!%p1279_p5) target bundleno = 894 (0x37e), region = 56 }
 0x35f   : > { %v765_v19 = vpop.f32.mrf.mxu1 }
 0x360   : > { %780 = vst [vmem:[%s299_s15 + $0x18] sm:$0xff] %v774_v18  ;;  %v766_v20 = vadd.f32 %v907_v12, %v765_v19 }
 0x362   : > { %778 = vst [vmem:[%s299_s15 + $0x8] sm:$0xff] %v766_v20 }
 0x363   : > { %s1431_s17 = smov (!%p791_p8, %s790_s17), 4 }
 0x364   : > { %s1360_s18 = sshll.u32 %s1431_s17, 7 }
 0x365   : > { %s795_s19 = ssub.s32 512, %s1360_s18 }
 0x366   : > { %796 = vsyncadd %s1355_s16, %s795_s19  ;;  %p919_p9 = scmp.ne.s32.totalorder %s1360_s18, 0  ;;  %s925_s20 = sshll.u32 %s1262_s28, 9 }
 0x367   : > { %s1369_s11 = scalar_lea.hbm %s1421_s7, %s925_s20  ;;  %s801_s29 = sshll.u32 %s299_s15, 4  ;;  %s1371_s29 = int_to_ptr.vmem [resolvable:$true] %s801_s29 }
 0x368   : > { %s1129_s21 = scalar_lea.vmem %s1371_s29, %s1360_s18  ;;  %s1198_s8 = smov [#allocation5]  }
 0x369   : > { %p1130_p5 = scmp.ne.s32.totalorder %s1371_s29, %s1129_s21  ;;  %s1133_s9 = sshll.u32 %s1198_s8, 4  ;;  %s1134_s9 = int_to_ptr.vmem [resolvable:$false] %s1133_s9 }
 0x36a   : > { %s1135_s28 = scalar_lea.vmem %s1134_s9, 1024  ;;  %p1136_p12 = scmp.lt.s32.totalorder %s1371_s29, %s1134_s9 }
 0x36b   : > { %p1131_p10 = pnand %p1130_p5, %p919_p9  ;;  %p1137_p13 = scmp.lt.s32.totalorder %s1135_s28, %s1129_s21 }
 0x36d   : > { %p1132_p11 = pneg %p1131_p10  ;;  %p1138_p0 = por %p1137_p13, %p1136_p12 }
 0x36f   : > { %p1139_p1 = pnand %p1138_p0, %p1132_p11 }
 0x371   : > { %1142 = shalt.err (!%p1139_p1)
}
 0x372   : > { %s1143_s13 = scalar_lea.hbm %s1369_s11, %s1360_s18  ;;  %s1147_s17 = scalar_lea.hbm %s1421_s7, 896 }
 0x373   : > { %p1144_p2 = scmp.ne.s32.totalorder %s1369_s11, %s1143_s13  ;;  %p1148_p7 = scmp.lt.s32.totalorder %s1369_s11, %s1421_s7 }
 0x374   : > { %p1149_p6 = scmp.lt.s32.totalorder %s1147_s17, %s1143_s13 }
 0x375   : > { %p1145_p3 = pnand %p1144_p2, %p919_p9 }
 0x376   : > { %p1150_p8 = por %p1149_p6, %p1148_p7 }
 0x377   : > { %p1146_p4 = pneg %p1145_p3 }
 0x379   : > { %p1151_p5 = pnand %p1150_p8, %p1146_p4 }
 0x37b   : > { %1154 = shalt.err (!%p1151_p5)
}
 0x37c   : > { %s1199_s22 = smov 128   ;;  %s1200_s23 = smov 8  }
 0x37d   : > { %807 = dma.vmem_to_hbm [thread:$0]  (%p919_p9), %s1371_s29, %s1360_s18, %s1369_s11, %s1355_s16, %s1199_s22, %s1199_s22, %s1200_s23  }
 0x37e PF: > { %p1040_p10 = scmp.ge.s32.totalorder %s1193_s27, 2  ;;  %s816_s21 = sand.u32 1, %s1181_s24  }
 0x37f   : > { %p1425_p11 = scmp.ne.s32.totalorder %s1423_s12, 0  ;;  %s817_s8 = scalar_lea.sflag [#allocation4], %s816_s21 }
 0x381   : > { %p1035_p12 = pnand %p1040_p10, %p1425_p11 }
 0x383   : > { %p1036_p13 = pneg %p1035_p12 }
 0x385   : > { %1176 = dma.done.wait (%p1036_p13), %s817_s8, 512  }
 0x386   : > { %1178 = vsyncadd (%p1036_p13), %s817_s8, 4294966784  ;;  %p18_p0 = scmp.ge.s32.totalorder %s1266_s30, 4   ;;  %s1426_s24 = smov %s1185_s25 }
 0x387   : > { %s1427_s25 = smov %s1189_s26  ;;  %s1428_s26 = smov %s1277_s10 }
 0x388   : > { %s1429_s27 = smov %s1266_s30  ;;  %20 = sbr.rel (!%p18_p0) target bundleno = 4 (0x4), region = 90 }
 0x38d   :  { %822 = vsyncpa [#allocation3], 1 }
 0x38e   :  { %824 = vsyncpa [#allocation3 + $0x1], 1 }
 0x38f   :  { %825 = vsyncpa [#allocation4], 1 }
 0x390   :  { %827 = vsyncpa [#allocation4 + $0x1], 1 }

// kernel: tpu_custom_call.1
= control target key start
LH: loop header
LB: loop body
LE: loop exit
PB: predicated region body
PF: predicated region fallthrough
CT: control target
= control target key end

     0   :  { %12 = vsyncpa [#allocation3], 0  ;;  %s1414_s0 = inlined_call_operand.vmem [shape: f32[50,16], index: 0, kind: input, shape index: {}]   ;;  %s1415_s1 = inlined_call_operand.vmem [shape: bf16[16,128], index: 1, kind: input, shape index: {}]   ;;  %s1416_s2 = inlined_call_operand.vmem [shape: f32[1,128], index: 2, kind: input, shape index: {}]   ;;  %s1417_s3 = inlined_call_operand.hbm [shape: bf16[2,128,128], index: 3, kind: input, shape index: {}]   ;;  %s1418_s4 = inlined_call_operand.vmem [shape: f32[2,1,128], index: 4, kind: input, shape index: {}]   ;;  %s1419_s5 = inlined_call_operand.vmem [shape: bf16[128,128], index: 5, kind: input, shape index: {}]   ;;  %s1420_s6 = inlined_call_operand.vmem [shape: f32[1,128], index: 6, kind: input, shape index: {}]   ;;  %s1421_s7 = inlined_call_operand.hbm [shape: f32[50,128], index: 7, kind: output, shape index: {}]  }
   0x1   :  { %13 = vsyncpa [#allocation4], 0 }
   0x2   :  { %15 = vsyncpa [#allocation4 + $0x1], 0  ;;  %s1241_s24 = smov 0   ;;  %s1243_s25 = smov 0  }
   0x3   :  { %s1245_s26 = smov 0   ;;  %s1247_s27 = smov 0  }
   0x4 LB: > { %s1262_s28 = sadd.s32 4294967295, %s1193_s27   ;;  %s875_s29 = sadd.s32 4294967294, %s1193_s27   ;;  %s1193_s27 = sphi %s1247_s27, %s1429_s27   ;;  %s1189_s26 = sphi %s1245_s26, %s1428_s26   ;;  %s1185_s25 = sphi %s1243_s25, %s1427_s25   ;;  %s1181_s24 = sphi %s1241_s24, %s1426_s24  }
   0x5   : > { %s1266_s30 = sadd.s32 1, %s1193_s27   ;;  %s180_s8 = sadd.s32 1, %s1189_s26 }
   0x6   : > { %s177_s9 = ssub.s32 %s1193_s27, %s1266_s30  ;;  %p190_p0 = scmp.ne.s32.totalorder %s1189_s26, %s1185_s25 }
   0x7   : > { %p178_p1 = scmp.eq.s32.totalorder %s177_s9, 0  ;;  %p191_p2 = scmp.eq.s32.totalorder %s1262_s28, 1 }
   0x8   : > { %p196_p3 = scmp.ne.s32.totalorder %s1185_s25, %s1181_s24  ;;  %p197_p4 = scmp.eq.s32.totalorder %s875_s29, 1 }
   0x9   : > { %s1277_s10 = scalar_select %p178_p1, %s1189_s26, %s180_s8  }
   0xa   : > { %p1279_p5 = por %p191_p2, %p190_p0  ;;  %p1283_p6 = por %p197_p4, %p196_p3 }
   0xb   : > { %p876_p7 = scmp.ge.s32.totalorder %s1193_s27, 1  ;;  %p204_p8 = scmp.lt.s32.totalorder %s1193_s27, 3 }
   0xc   : > { %s1423_s12 = scalar_select %p1283_p6, 1, 0 }
   0xd   : > { %p1038_p9 = scmp.eq.s32.totalorder %s1262_s28, 0  ;;  %p1290_p10 = pnand %p876_p7, %p204_p8 }
   0xe   : > { %s1195_s14 = smov [#allocation2]  }
   0xf   : > { %s222_s15 = sshll.u32 %s1195_s14, 4  ;;  %p1030_p11 = pneg %p1290_p10  ;;  %s223_s15 = int_to_ptr.vmem [resolvable:$true] %s222_s15 }
  0x10   : > { %s1114_s16 = scalar_lea.vmem %s223_s15, 2048  ;;  %p1122_p3 = scmp.lt.s32.totalorder %s223_s15, %s223_s15 }
  0x11   : > { %p1031_p12 = pnand %p1038_p9, %p1030_p11  ;;  %p1115_p0 = scmp.ne.s32.totalorder %s223_s15, %s1114_s16 }
  0x12   : > { %p1123_p4 = scmp.lt.s32.totalorder %s1114_s16, %s1114_s16 }
  0x13   : > { %p1105_p13 = pneg %p1031_p12 }
  0x14   : > { %p1124_p6 = por %p1123_p4, %p1122_p3 }
  0x15   : > { %p1117_p1 = pnand %p1115_p0, %p1105_p13 }
  0x17   : > { %p1118_p2 = pneg %p1117_p1 }
  0x19   : > { %p1125_p7 = pnand %p1124_p6, %p1118_p2 }
  0x1b   : > { %1128 = shalt.err (!%p1125_p7)
}
  0x1c   : > { %s1196_s17 = smov 64   ;;  %s1197_s18 = smov 4  }
  0x1d   : > { %1033 = dma.hbm_to_vmem [thread:$0]  (!%p1031_p12), %s1417_s3, 2048, %s223_s15, [#allocation3], %s1196_s17, %s1196_s17, %s1197_s18  }
  0x1e   : > { %264 = sbr.rel (%p1290_p10) target bundleno = 894 (0x37e), region = 48 }
  0x23   : > { %1172 = dma.done.wait (%p1038_p9), [#allocation3], 2048  }
  0x24   : > { %1174 = vsyncadd (%p1038_p9), [#allocation3], 4294965248  ;;  %s1308_s21 = sshll.u32 %s1262_s28, 2  ;;  %v1078_v0 = vld [vmem:[%s1415_s1] sm:$0xff]   ;;  %vm341_vm0 = vcmask 130048   ;;  %v1079_v7 = vld [vmem:[#allocation2 + $0x38] sm:$0xff]  }
  0x25   : > { %p305_p6 = scmp.lt.s32.totalorder %s1308_s21, 6  ;;  %959 = vmatprep.subr.bf16.mxu0 %v1078_v0  ;;  %v1080_v8 = vld [vmem:[#allocation2 + $0x30] sm:$0xff]   ;;  %965 = vmatprep.subr.bf16.mxu1 %v1079_v7  ;;  %v1081_v9 = vld [vmem:[#allocation2 + $0x28] sm:$0xff]   ;;  %v1082_v10 = vld [vmem:[#allocation2 + $0x20] sm:$0xff]   ;;  %s297_s8 = sand.u32 1, %s1185_s25  }
  0x26   : > { %960 = vmatpush3.bf16.msra.mxu0 %v1078_v0  ;;  %966 = vmatpush3.bf16.msra.mxu1 %v1079_v7  ;;  %v1083_v11 = vld [vmem:[#allocation2 + $0x18] sm:$0xff]   ;;  %v1084_v12 = vld [vmem:[#allocation2 + $0x10] sm:$0xff]   ;;  %v1085_v13 = vld [vmem:[#allocation2 + $0x8] sm:$0xff]   ;;  %s1355_s16 = scalar_lea.sflag [#allocation4], %s297_s8  ;;  %s790_s17 = ssub.s32 (%p1279_p5), 7, %s1308_s21 }
  0x27   : > { %s306_s22 = scalar_select %p305_p6, %s1308_s21, 6  ;;  %967 = vmatprep.subr.bf16.mxu1 %v1080_v8  ;;  %v1086_v14 = vld [vmem:[#allocation2] sm:$0xff]   ;;  %v1087_v15 = vld [vmem:[#allocation2 + $0x78] sm:$0xff]   ;;  %v1088_v16 = vld [vmem:[#allocation2 + $0x70] sm:$0xff]  }
  0x28   : > { %985 = vmatprep.subr.bf16.mxu0 %v1087_v15  ;;  %v1089_v17 = vld [vmem:[#allocation2 + $0x68] sm:$0xff]   ;;  %v1090_v18 = vld [vmem:[#allocation2 + $0x60] sm:$0xff]   ;;  %v1091_v19 = vld [vmem:[#allocation2 + $0x58] sm:$0xff]   ;;  %p791_p8 = scmp.lt.s32.totalorder (%p1279_p5), %s790_s17, 4 }
  0x29   : > { %s883_s23 = sshll.u32 %s306_s22, 3  ;;  %v884_v22 = vld [vmem:[%s1416_s2] ss:$0 sm:$0xff]  ;;  %v1092_v35 = vld [vmem:[#allocation2 + $0x50] sm:$0xff]   ;;  %v1093_v36 = vld [vmem:[#allocation2 + $0x48] sm:$0xff]  }
  0x2a   : > { %s308_s9 = scalar_lea.vmem %s1414_s0, %s883_s23  ;;  %968 = vmatpush3.bf16.msra.mxu1 %v1080_v8  ;;  %v1094_v37 = vld [vmem:[#allocation2 + $0x40] sm:$0xff]   ;;  %v1095_v38 = vld [vmem:[%s1419_s5 + $0x38] sm:$0xff]   ;;  %v1096_v39 = vld [vmem:[%s1419_s5 + $0x30] sm:$0xff]  }
  0x2b   : > { %v320_v1 = vld [vmem:[%s308_s9] sm:$0xff]  ;;  %v321_v2 = vld [vmem:[%s308_s9 + $0x8] sm:$0xff]  ;;  %v322_v3 = vld [vmem:[%s308_s9 + $0x10] sm:$0xff]  ;;  %969 = vmatprep.subr.bf16.mxu1 %v1081_v9 }
  0x2c   : > { %v327_v4 = vpack.c.bf16 %v321_v2, %v320_v1  ;;  %v323_v5 = vld [vmem:[%s308_s9 + $0x18] sm:$0xff]  ;;  %v1097_v40 = vld [vmem:[%s1419_s5 + $0x28] sm:$0xff]   ;;  %v1098_v41 = vld [vmem:[%s1419_s5 + $0x20] sm:$0xff]   ;;  %s881_s9 = sshll.u32 %s297_s8, 5 }
  0x2d   : > { %v328_v6 = vpack.c.bf16 %v323_v5, %v322_v3  ;;  %v1099_v42 = vld [vmem:[%s1419_s5 + $0x18] sm:$0xff]   ;;  %v888_v45 = vld [vmem:[%s1418_s4] ss:$0 sm:$0xff]  ;;  %v1100_v58 = vld [vmem:[%s1419_s5 + $0x10] sm:$0xff]   ;;  %s299_s15 = scalar_lea.vmem [#allocation5], %s881_s9 }
  0x2e   : > { %961 = vmatprep.mubr.msk.bf16.mxu0 %vm341_vm0, %v327_v4  ;;  %970 = vmatpush3.bf16.msra.mxu1 %v1081_v9  ;;  %v1101_v59 = vld [vmem:[%s1419_s5 + $0x8] sm:$0xff]   ;;  %v1102_v60 = vld [vmem:[%s1419_s5] sm:$0xff]  }
  0x2f   : > { %962 = vmatmul.mubr.msk.bf16.vlgmr.msra.gmra.mxu0 %vm341_vm0, %v328_v6  ;;  %971 = vmatprep.subr.bf16.mxu1 %v1082_v10  ;;  %v898_v63 = vld [vmem:[%s1418_s4 + $0x1] ss:$0 sm:$0xff] }
  0x30   : > { %986 = vmatpush3.bf16.msra.mxu0 %v1087_v15 }
  0x31   : > { %987 = vmatprep.subr.bf16.mxu0 %v1088_v16 }
  0x32   : > { %972 = vmatpush3.bf16.msra.mxu1 %v1082_v10 }
  0x33   : > { %973 = vmatprep.subr.bf16.mxu1 %v1083_v11 }
  0x34   : > { %988 = vmatpush3.bf16.msra.mxu0 %v1088_v16 }
  0x35   : > { %989 = vmatprep.subr.bf16.mxu0 %v1089_v17 }
  0x36   : > { %974 = vmatpush3.bf16.msra.mxu1 %v1083_v11 }
  0x37   : > { %975 = vmatprep.subr.bf16.mxu1 %v1084_v12 }
  0x38   : > { %990 = vmatpush3.bf16.msra.mxu0 %v1089_v17 }
  0x39   : > { %991 = vmatprep.subr.bf16.mxu0 %v1090_v18 }
  0x3a   : > { %976 = vmatpush3.bf16.msra.mxu1 %v1084_v12  ;;  %v907_v12 = vld [vmem:[%s1420_s6] ss:$0 sm:$0xff] }
  0x3b   : > { %977 = vmatprep.subr.bf16.mxu1 %v1085_v13 }
  0x3c   : > { %992 = vmatpush3.bf16.msra.mxu0 %v1090_v18 }
  0x3d   : > { %993 = vmatprep.subr.bf16.mxu0 %v1091_v19 }
  0x3e   : > { %978 = vmatpush3.bf16.msra.mxu1 %v1085_v13 }
  0x3f   : > { %979 = vmatprep.subr.bf16.mxu1 %v1086_v14 }
  0x40   : > { %994 = vmatpush3.bf16.msra.mxu0 %v1091_v19 }
  0x41   : > { %995 = vmatprep.subr.bf16.mxu0 %v1092_v35 }
  0x42   : > { %980 = vmatpush3.bf16.msra.mxu1 %v1086_v14 }
  0x43   : > { %1005 = vmatprep.subr.bf16.mxu1 %v1095_v38 }
  0x44   : > { %996 = vmatpush3.bf16.msra.mxu0 %v1092_v35 }
  0x45   : > { %997 = vmatprep.subr.bf16.mxu0 %v1093_v36 }
  0x48   : > { %998 = vmatpush3.bf16.msra.mxu0 %v1093_v36 }
  0x49   : > { %999 = vmatprep.subr.bf16.mxu0 %v1094_v37 }
  0x4c   : > { %1000 = vmatpush3.bf16.msra.mxu0 %v1094_v37 }
  0xef   : > { %v963_v20 = vpop.f32.mrf.mxu0 }
  0xf0   : > { %v391_v26 = vadd.f32 %v963_v20, %v884_v22 }
  0xf1   : > { %v382_v21 = vpop.f32.mrf.mxu0 }
  0xf2   : > { %v383_v24 = vadd.f32 %v884_v22, %v382_v21  ;;  %v399_v32 = vmax.f32 %v391_v26, 0.0 }
  0xf3   : > { %v964_v23 = vpop.f32.mrf.mxu0 }
  0xf4   : > { %v394_v25 = vadd.f32 %v964_v23, %v884_v22  ;;  %v397_v30 = vmax.f32 %v383_v24, 0.0 }
  0xf5   : > { %v385_v27 = vpop.f32.mrf.mxu0 }
  0xf6   : > { %v386_v28 = vadd.f32 %v884_v22, %v385_v27  ;;  %v400_v29 = vmax.f32 %v394_v25, 0.0 }
  0xf8   : > { %v398_v31 = vmax.f32 %v386_v28, 0.0  ;;  %v419_v34 = vpack.c.bf16 %v400_v29, %v399_v32 }
  0xfa   : > { %v418_v33 = vpack.c.bf16 %v398_v31, %v397_v30 }
  0xfc   : > { %981 = vmatprep.mubr.bf16.mxu1 %v418_v33 }
  0xfd   : > { %982 = vmatmul.mubr.bf16.vlgmr.msra.gmra.mxu1 %v419_v34 }
  0xfe   : > { %1006 = vmatpush3.bf16.msra.mxu1 %v1095_v38 }
  0xff   : > { %1007 = vmatprep.subr.bf16.mxu1 %v1096_v39 }
 0x102   : > { %1008 = vmatpush3.bf16.msra.mxu1 %v1096_v39 }
 0x103   : > { %1009 = vmatprep.subr.bf16.mxu1 %v1097_v40 }
 0x106   : > { %1010 = vmatpush3.bf16.msra.mxu1 %v1097_v40 }
 0x107   : > { %1011 = vmatprep.subr.bf16.mxu1 %v1098_v41 }
 0x10a   : > { %1012 = vmatpush3.bf16.msra.mxu1 %v1098_v41 }
 0x10b   : > { %1013 = vmatprep.subr.bf16.mxu1 %v1099_v42 }
 0x10e   : > { %1014 = vmatpush3.bf16.msra.mxu1 %v1099_v42 }
 0x10f   : > { %1015 = vmatprep.subr.bf16.mxu1 %v1100_v58 }
 0x112   : > { %1016 = vmatpush3.bf16.msra.mxu1 %v1100_v58 }
 0x113   : > { %1017 = vmatprep.subr.bf16.mxu1 %v1101_v59 }
 0x116   : > { %1018 = vmatpush3.bf16.msra.mxu1 %v1101_v59 }
 0x117   : > { %1019 = vmatprep.subr.bf16.mxu1 %v1102_v60 }
 0x11a   : > { %1020 = vmatpush3.bf16.msra.mxu1 %v1102_v60 }
 0x1bd   : > { %v983_v43 = vpop.f32.mrf.mxu1 }
 0x1be   : > { %v517_v49 = vadd.f32 %v983_v43, %v888_v45 }
 0x1bf   : > { %v508_v44 = vpop.f32.mrf.mxu1 }
 0x1c0   : > { %v509_v47 = vadd.f32 %v888_v45, %v508_v44  ;;  %v525_v55 = vmax.f32 %v517_v49, 0.0 }
 0x1c1   : > { %v984_v46 = vpop.f32.mrf.mxu1 }
 0x1c2   : > { %v520_v48 = vadd.f32 %v984_v46, %v888_v45  ;;  %v523_v53 = vmax.f32 %v509_v47, 0.0 }
 0x1c3   : > { %v511_v50 = vpop.f32.mrf.mxu1 }
 0x1c4   : > { %v512_v51 = vadd.f32 %v888_v45, %v511_v50  ;;  %v526_v52 = vmax.f32 %v520_v48, 0.0 }
 0x1c6   : > { %v524_v54 = vmax.f32 %v512_v51, 0.0  ;;  %v547_v57 = vpack.c.bf16 %v526_v52, %v525_v55 }
 0x1c8   : > { %v546_v56 = vpack.c.bf16 %v524_v54, %v523_v53 }
 0x1ca   : > { %1001 = vmatprep.mubr.bf16.mxu0 %v546_v56 }
 0x1cb   : > { %1002 = vmatmul.mubr.bf16.vlgmr.msra.gmra.mxu0 %v547_v57 }
 0x28b   : > { %v1003_v61 = vpop.f32.mrf.mxu0 }
 0x28c   : > { %v645_v3 = vadd.f32 %v1003_v61, %v898_v63 }
 0x28d   : > { %v636_v62 = vpop.f32.mrf.mxu0 }
 0x28e   : > { %v637_v1 = vadd.f32 %v898_v63, %v636_v62  ;;  %v653_v9 = vmax.f32 %v645_v3, 0.0 }
 0x28f   : > { %v1004_v0 = vpop.f32.mrf.mxu0 }
 0x290   : > { %v648_v2 = vadd.f32 %v1004_v0, %v898_v63  ;;  %v651_v7 = vmax.f32 %v637_v1, 0.0 }
 0x291   : > { %v639_v4 = vpop.f32.mrf.mxu0 }
 0x292   : > { %v640_v5 = vadd.f32 %v898_v63, %v639_v4  ;;  %v654_v6 = vmax.f32 %v648_v2, 0.0 }
 0x294   : > { %v652_v8 = vmax.f32 %v640_v5, 0.0  ;;  %v656_v11 = vpack.c.bf16 %v654_v6, %v653_v9 }
 0x296   : > { %v655_v10 = vpack.c.bf16 %v652_v8, %v651_v7 }
 0x298   : > { %1021 = vmatprep.mubr.bf16.mxu1 %v655_v10 }
 0x299   : > { %1022 = vmatmul.mubr.bf16.vlgmr.msra.gmra.mxu1 %v656_v11 }
 0x359   : > { %v1023_v13 = vpop.f32.mrf.mxu1 }
 0x35a   : > { %v771_v14 = vadd.f32 %v1023_v13, %v907_v12 }
 0x35b   : > { %v762_v15 = vpop.f32.mrf.mxu1 }
 0x35c   : > { %779 = vst [vmem:[%s299_s15 + $0x10] sm:$0xff] %v771_v14  ;;  %v763_v16 = vadd.f32 %v907_v12, %v762_v15 }
 0x35d   : > { %v1024_v17 = vpop.f32.mrf.mxu1 }
 0x35e   : > { %777 = vst [vmem:[%s299_s15] sm:$0xff] %v763_v16  ;;  %v774_v18 = vadd.f32 %v1024_v17, %v907_v12  ;;  %788 = sbr.rel (!%p1279_p5) target bundleno = 894 (0x37e), region = 56 }
 0x35f   : > { %v765_v19 = vpop.f32.mrf.mxu1 }
 0x360   : > { %780 = vst [vmem:[%s299_s15 + $0x18] sm:$0xff] %v774_v18  ;;  %v766_v20 = vadd.f32 %v907_v12, %v765_v19 }
 0x362   : > { %778 = vst [vmem:[%s299_s15 + $0x8] sm:$0xff] %v766_v20 }
 0x363   : > { %s1431_s17 = smov (!%p791_p8, %s790_s17), 4 }
 0x364   : > { %s1360_s18 = sshll.u32 %s1431_s17, 7 }
 0x365   : > { %s795_s19 = ssub.s32 512, %s1360_s18 }
 0x366   : > { %796 = vsyncadd %s1355_s16, %s795_s19  ;;  %p919_p9 = scmp.ne.s32.totalorder %s1360_s18, 0  ;;  %s925_s20 = sshll.u32 %s1262_s28, 9 }
 0x367   : > { %s1369_s11 = scalar_lea.hbm %s1421_s7, %s925_s20  ;;  %s801_s29 = sshll.u32 %s299_s15, 4  ;;  %s1371_s29 = int_to_ptr.vmem [resolvable:$true] %s801_s29 }
 0x368   : > { %s1129_s21 = scalar_lea.vmem %s1371_s29, %s1360_s18  ;;  %s1198_s8 = smov [#allocation5]  }
 0x369   : > { %p1130_p5 = scmp.ne.s32.totalorder %s1371_s29, %s1129_s21  ;;  %s1133_s9 = sshll.u32 %s1198_s8, 4  ;;  %s1134_s9 = int_to_ptr.vmem [resolvable:$false] %s1133_s9 }
 0x36a   : > { %s1135_s28 = scalar_lea.vmem %s1134_s9, 1024  ;;  %p1136_p12 = scmp.lt.s32.totalorder %s1371_s29, %s1134_s9 }
 0x36b   : > { %p1131_p10 = pnand %p1130_p5, %p919_p9  ;;  %p1137_p13 = scmp.lt.s32.totalorder %s1135_s28, %s1129_s21 }
 0x36d   : > { %p1132_p11 = pneg %p1131_p10  ;;  %p1138_p0 = por %p1137_p13, %p1136_p12 }
 0x36f   : > { %p1139_p1 = pnand %p1138_p0, %p1132_p11 }
 0x371   : > { %1142 = shalt.err (!%p1139_p1)
}
 0x372   : > { %s1143_s13 = scalar_lea.hbm %s1369_s11, %s1360_s18  ;;  %s1147_s17 = scalar_lea.hbm %s1421_s7, 896 }
 0x373   : > { %p1144_p2 = scmp.ne.s32.totalorder %s1369_s11, %s1143_s13  ;;  %p1148_p7 = scmp.lt.s32.totalorder %s1369_s11, %s1421_s7 }
 0x374   : > { %p1149_p6 = scmp.lt.s32.totalorder %s1147_s17, %s1143_s13 }
 0x375   : > { %p1145_p3 = pnand %p1144_p2, %p919_p9 }
 0x376   : > { %p1150_p8 = por %p1149_p6, %p1148_p7 }
 0x377   : > { %p1146_p4 = pneg %p1145_p3 }
 0x379   : > { %p1151_p5 = pnand %p1150_p8, %p1146_p4 }
 0x37b   : > { %1154 = shalt.err (!%p1151_p5)
}
 0x37c   : > { %s1199_s22 = smov 128   ;;  %s1200_s23 = smov 8  }
 0x37d   : > { %807 = dma.vmem_to_hbm [thread:$0]  (%p919_p9), %s1371_s29, %s1360_s18, %s1369_s11, %s1355_s16, %s1199_s22, %s1199_s22, %s1200_s23  }
 0x37e PF: > { %p1040_p10 = scmp.ge.s32.totalorder %s1193_s27, 2  ;;  %s816_s21 = sand.u32 1, %s1181_s24  }
 0x37f   : > { %p1425_p11 = scmp.ne.s32.totalorder %s1423_s12, 0  ;;  %s817_s8 = scalar_lea.sflag [#allocation4], %s816_s21 }
 0x381   : > { %p1035_p12 = pnand %p1040_p10, %p1425_p11 }
 0x383   : > { %p1036_p13 = pneg %p1035_p12 }
 0x385   : > { %1176 = dma.done.wait (%p1036_p13), %s817_s8, 512  }
 0x386   : > { %1178 = vsyncadd (%p1036_p13), %s817_s8, 4294966784  ;;  %p18_p0 = scmp.ge.s32.totalorder %s1266_s30, 4   ;;  %s1426_s24 = smov %s1185_s25 }
 0x387   : > { %s1427_s25 = smov %s1189_s26  ;;  %s1428_s26 = smov %s1277_s10 }
 0x388   : > { %s1429_s27 = smov %s1266_s30  ;;  %20 = sbr.rel (!%p18_p0) target bundleno = 4 (0x4), region = 90 }
 0x38d   :  { %822 = vsyncpa [#allocation3], 1 }
 0x38e   :  { %824 = vsyncpa [#allocation3 + $0x1], 1 }
 0x38f   :  { %825 = vsyncpa [#allocation4], 1 }
 0x390   :  { %827 = vsyncpa [#allocation4 + $0x1], 1 }

</bundles_post_ra>
